<compile_context>
chip_gen: v7x
topology: tpu7x:2x2x1
jax: 0.10.0
libtpu: 0.0.40
codegen_flags: <defaults>
</compile_context>

<pallas_src>
import functools

import jax
import jax.numpy as jnp
from jax import lax
from jax.experimental import pallas as pl
from jax.experimental.pallas import tpu as pltpu


def _gelu_exact(x):
    # PyTorch nn.GELU() default (erf formulation).
    return 0.5 * x * (1.0 + lax.erf(x * 0.7071067811865476))


def _round_up(x, m):
    return -(-x // m) * m


def _pinned_spec(shape, index_map):
    """BlockSpec for grid-constant operands: single-buffered when supported."""
    buffered = getattr(pl, "Buffered", None)
    if buffered is not None:
        try:
            return pl.BlockSpec(shape, index_map, pipeline_mode=buffered(1))
        except TypeError:  # older JAX without pipeline_mode / Buffered kwarg
            pass
    return pl.BlockSpec(shape, index_map)


def memory_kernel(x_ref, m_ref, w12_ref, b12_ref, w3_ref, b3_ref, o_ref,
                  *, mem_num, n_splits):
    Dm = o_ref.shape[-1]
    K_pad = m_ref.shape[-2]
    rows = o_ref.shape[-2]

    m = m_ref[...]                 # [K_pad, Dm]   (compute dtype)
    cdt = m.dtype
    w12 = w12_ref[...]             # [D, 2*Dm]     (compute dtype)
    b12 = b12_ref[...]             # [1, 2*Dm]     (f32)
    w3 = w3_ref[...]               # [Dm, Dm]      (compute dtype)
    b3 = b3_ref[...]               # [1, Dm]       (f32)

    split = rows // n_splits
    if K_pad != mem_num:
        kmask = lax.broadcasted_iota(jnp.int32, (split, K_pad), 1) < mem_num
    else:
        kmask = None

    # Unrolled independent chains: gives the LLO scheduler MXU / EUP / VALU
    # co-issue opportunities across the otherwise fully serial per-tile chain.
    for s in range(n_splits):
        xq = x_ref[s * split:(s + 1) * split, :].astype(cdt)     # [split, D]

        # Fused l1 || l2 projection (one LHS pass, 2*Dm-wide RHS), f32 accum.
        h12 = jnp.dot(xq, w12, preferred_element_type=jnp.float32) + b12
        h1 = h12[:, :Dm]                                          # l1 branch
        h2 = _gelu_exact(h12[:, Dm:])                             # gelu(l2), f32

        # scores = h1 @ M[t].T without materializing a transpose.
        scores = lax.dot_general(
            h1.astype(cdt), m,
            dimension_numbers=(((1,), (1,)), ((), ())),
            preferred_element_type=jnp.float32)                   # [split, K_pad]
        if kmask is not None:
            scores = jnp.where(kmask, scores, -1e30)              # mask padded K lanes

        # Numerically stable softmax; normalization is deferred until after
        # the value matmul so the scale touches [split, Dm] not [split, K_pad].
        scores = scores - jnp.max(scores, axis=-1, keepdims=True)
        p = jnp.exp(scores)
        denom = jnp.sum(p, axis=-1, keepdims=True)
        value = jnp.dot(p.astype(cdt), m,
                        preferred_element_type=jnp.float32)       # [split, Dm]
        value = value * pl.reciprocal(denom, approx=True)         # EUP slot

        # Gate with the gelu branch, then l3.
        out = jnp.dot((value * h2).astype(cdt), w3,
                      preferred_element_type=jnp.float32) + b3
        o_ref[s * split:(s + 1) * split, :] = out.astype(o_ref.dtype)


def memory_forward(x, M, w1, b1, w2, b2, w3, b3, *,
                   compute_dtype=jnp.bfloat16, row_tile=None, n_splits=None,
                   vmem_budget_bytes=24 << 20):
    """x: [B, T, N, model_dim] -> [B, T, N, mem_dim].

    Weights are stored as (in, out), i.e. W.T of the torch Linear.
    compute_dtype=jnp.bfloat16 (default) feeds the MXU bf16 operands on all
    generations while accumulation, softmax, GELU and gating stay in float32;
    pass compute_dtype=None for a pure f32 path.
    """
    B, T, N, D = x.shape
    Tm, K, Dm = M.shape
    assert Tm == T, "M leading dim must equal T"
    out_dtype = x.dtype
    cdt = jnp.dtype(compute_dtype) if compute_dtype is not None else jnp.dtype(x.dtype)
    cdt_bytes = cdt.itemsize
    x_bytes = jnp.dtype(x.dtype).itemsize
    out_bytes = jnp.dtype(out_dtype).itemsize

    # --- parameter prep (tiny, one-time; x itself is never repacked) --------
    w12 = jnp.concatenate([w1, w2], axis=1).astype(cdt)                 # [D, 2*Dm]
    b12 = jnp.concatenate([b1.reshape(1, -1), b2.reshape(1, -1)],
                          axis=1).astype(jnp.float32)                   # [1, 2*Dm]
    w3c = w3.astype(cdt)                                                # [Dm, Dm]
    b3c = b3.reshape(1, -1).astype(jnp.float32)                         # [1, Dm]

    # Pad mem_num to a lane-dense multiple of 128 (zero rows, masked in-kernel).
    K_pad = _round_up(K, 128)
    Mp = M.astype(cdt)
    if K_pad != K:
        Mp = jnp.pad(Mp, ((0, 0), (0, K_pad - K), (0, 0)))

    # --- row tile along the node axis N --------------------------------------
    if row_tile is None:
        if N % 8 != 0:
            # Full-dim block is always layout-legal and avoids any repack.
            # TODO(synk): for very large N not divisible by 8, tile with
            # boundary blocks instead of a single full-N block.
            row_tile = N
        else:
            per_row = 2 * (D * x_bytes + Dm * out_bytes)   # double-buffered in+out
            cap = max(8, min(1024, (vmem_budget_bytes // per_row) // 8 * 8))
            limit = min(N, cap)
            best, t = 8, 8
            while t <= limit:
                if N % t == 0:
                    best = t
                t += 8
            row_tile = best
    assert N % row_tile == 0 or row_tile == N, "row_tile must divide N"
    n_rt = pl.cdiv(N, row_tile)

    if n_splits is None:
        n_splits = 2 if (row_tile % 16 == 0 and row_tile >= 32) else 1
    if row_tile % (8 * n_splits) != 0:
        n_splits = 1

    # --- explicit VMEM limit (v5e/v6e scoped defaults are 16/32 MiB; cap at
    #     48 MiB to stay under v7x's 64 MiB physical VMEM) --------------------
    est = (2 * row_tile * D * x_bytes                  # x tile, double-buffered
           + 2 * row_tile * Dm * out_bytes             # out tile, double-buffered
           + 2 * K_pad * Dm * cdt_bytes                # M[t], double-buffered
           + (D * 2 * Dm + Dm * Dm) * cdt_bytes        # pinned weights
           + 3 * Dm * 4                                # biases (f32)
           + 6 * row_tile * max(2 * Dm, K_pad) * 4)    # f32 intermediates headroom
    vmem_limit = int(min(max(2 * est, 32 << 20), 48 << 20))

    total_rows = B * T * N
    cost = pl.CostEstimate(
        flops=2 * total_rows * (D * 2 * Dm + 2 * K_pad * Dm + Dm * Dm),
        transcendentals=total_rows * (K_pad + Dm),        # exp + erf
        bytes_accessed=int(total_rows * D * x_bytes + total_rows * Dm * out_bytes
                           + Mp.size * cdt_bytes + w12.size * cdt_bytes
                           + w3c.size * cdt_bytes + (b12.size + b3c.size) * 4))

    kernel = functools.partial(memory_kernel, mem_num=K, n_splits=n_splits)

    out = pl.pallas_call(
        kernel,
        out_shape=jax.ShapeDtypeStruct((B, T, N, Dm), out_dtype),
        grid_spec=pltpu.PrefetchScalarGridSpec(
            num_scalar_prefetch=0,
            # t outermost -> M[t]'s block index is constant across the inner
            # (b, r) loops, so it is not re-fetched per step.
            grid=(T, B, n_rt),
            in_specs=[
                pl.BlockSpec((None, None, row_tile, D),
                             lambda t, b, r: (b, t, r, 0)),                 # x
                pl.BlockSpec((None, K_pad, Dm), lambda t, b, r: (t, 0, 0)), # M[t]
                _pinned_spec((D, 2 * Dm), lambda t, b, r: (0, 0)),          # W1||W2
                _pinned_spec((1, 2 * Dm), lambda t, b, r: (0, 0)),          # b1||b2
                _pinned_spec((Dm, Dm), lambda t, b, r: (0, 0)),             # W3
                _pinned_spec((1, Dm), lambda t, b, r: (0, 0)),              # b3
            ],
            out_specs=pl.BlockSpec((None, None, row_tile, Dm),
                                   lambda t, b, r: (b, t, r, 0)),
        ),
        compiler_params=pltpu.CompilerParams(
            dimension_semantics=("parallel", "parallel", "parallel"),
            vmem_limit_bytes=vmem_limit),
        cost_estimate=cost,
    )(x, Mp, w12, b12, w3c, b3c)

    return out


def memory_ref(x, M, w1, b1, w2, b2, w3, b3):
    """Pure-JAX reference matching the PyTorch forward semantics."""
    h1 = x @ w1 + b1
    h2 = _gelu_exact(x @ w2 + b2)
    scores = jnp.einsum('btnd,tkd->btnk', h1, M)
    p = jax.nn.softmax(scores, axis=-1)
    value = jnp.einsum('btnk,tkd->btnd', p, M)
    return (value * h2) @ w3 + b3


def _xavier_normal(key, shape):
    fan_in, fan_out = shape[-2], shape[-1]
    std = (2.0 / (fan_in + fan_out)) ** 0.5
    return std * jax.random.normal(key, shape, dtype=jnp.float32)


if __name__ == "__main__":
    # Small shapes consistent with the module defaults (scaled down):
    # x: [B, T, N, model_dim]; M: [T, mem_num, mem_dim]
    B, T, N = 2, 4, 64
    model_dim, mem_num, mem_dim = 64, 64, 128

    key = jax.random.PRNGKey(0)
    kx, kM, k1, k2, k3, kb1, kb2, kb3 = jax.random.split(key, 8)

    x = jax.random.normal(kx, (B, T, N, model_dim), dtype=jnp.float32)

    # Parameters (weights stored as (in, out), i.e. W.T of the torch Linear).
    M_param = _xavier_normal(kM, (T, mem_num, mem_dim))
    w1 = _xavier_normal(k1, (model_dim, mem_dim))
    w2 = _xavier_normal(k2, (model_dim, mem_dim))
    w3 = _xavier_normal(k3, (mem_dim, mem_dim))
    b1 = 0.01 * jax.random.normal(kb1, (1, mem_dim), dtype=jnp.float32)
    b2 = 0.01 * jax.random.normal(kb2, (1, mem_dim), dtype=jnp.float32)
    b3 = 0.01 * jax.random.normal(kb3, (1, mem_dim), dtype=jnp.float32)
    # NOTE: We1/We2 of MemoryAugmented are unused in forward, so they are omitted.

    ref = memory_ref(x, M_param, w1, b1, w2, b2, w3, b3)

    # Default (performance) path: bf16 MXU operands, f32 accumulation.
    out_bf16 = jax.block_until_ready(
        memory_forward(x, M_param, w1, b1, w2, b2, w3, b3))
    assert out_bf16.shape == (B, T, N, mem_dim)
    assert bool(jnp.max(jnp.abs(out_bf16 - ref)) < 5e-2), "bf16 mismatch vs reference"

    # Pure f32 path: tight check against the pure-JAX reference.
    out_f32 = jax.block_until_ready(
        memory_forward(x, M_param, w1, b1, w2, b2, w3, b3, compute_dtype=None))
    assert out_f32.shape == (B, T, N, mem_dim)
    assert jnp.allclose(out_f32, ref, atol=3e-3, rtol=3e-3), "f32 mismatch vs reference"

    print("KERNEL_OK")
</pallas_src>

<mosaic_0001>
module attributes {stable_mosaic.version = 11 : i64} {
  func.func @memory_kernel(%arg0: i32, %arg1: i32, %arg2: i32, %arg3: memref<1x1x64x64xf32, #tpu.memory_space<vmem>>, %arg4: memref<1x128x128xbf16, #tpu.memory_space<vmem>>, %arg5: memref<64x256xbf16, #tpu.memory_space<vmem>>, %arg6: memref<1x256xf32, #tpu.memory_space<vmem>>, %arg7: memref<128x128xbf16, #tpu.memory_space<vmem>>, %arg8: memref<1x128xf32, #tpu.memory_space<vmem>>, %arg9: memref<1x1x64x128xf32, #tpu.memory_space<vmem>>) attributes {dimension_semantics = [#tpu.dimension_semantics<parallel>, #tpu.dimension_semantics<parallel>, #tpu.dimension_semantics<parallel>], iteration_bounds = array<i64: 4, 2, 1>, scalar_prefetch = 0 : i64, scratch_operands = 0 : i64, tpu.core_type = #tpu.core_type<tc>, window_params = [{transform_indices = @transform_0, window_bounds = array<i64: 1, 1, 64, 64>}, {transform_indices = @transform_1, window_bounds = array<i64: 1, 128, 128>}, {pipeline_mode = #tpu.pipeline_mode<synchronous>, transform_indices = @transform_2, window_bounds = array<i64: 64, 256>}, {pipeline_mode = #tpu.pipeline_mode<synchronous>, transform_indices = @transform_3, window_bounds = array<i64: 1, 256>}, {pipeline_mode = #tpu.pipeline_mode<synchronous>, transform_indices = @transform_4, window_bounds = array<i64: 128, 128>}, {pipeline_mode = #tpu.pipeline_mode<synchronous>, transform_indices = @transform_5, window_bounds = array<i64: 1, 128>}, {transform_indices = @transform_6, window_bounds = array<i64: 1, 1, 64, 128>}]} {
    %c0 = arith.constant 0 : index
    %c0_0 = arith.constant 0 : index
    %c0_1 = arith.constant 0 : index
    %0 = vector.load %arg4[%c0, %c0_0, %c0_1] : memref<1x128x128xbf16, #tpu.memory_space<vmem>>, vector<1x128x128xbf16>
    %1 = vector.shape_cast %0 : vector<1x128x128xbf16> to vector<128x128xbf16>
    %c0_2 = arith.constant 0 : index
    %c0_3 = arith.constant 0 : index
    %2 = vector.load %arg5[%c0_2, %c0_3] : memref<64x256xbf16, #tpu.memory_space<vmem>>, vector<64x256xbf16>
    %c0_4 = arith.constant 0 : index
    %c0_5 = arith.constant 0 : index
    %3 = vector.load %arg6[%c0_4, %c0_5] : memref<1x256xf32, #tpu.memory_space<vmem>>, vector<1x256xf32>
    %c0_6 = arith.constant 0 : index
    %c0_7 = arith.constant 0 : index
    %4 = vector.load %arg7[%c0_6, %c0_7] : memref<128x128xbf16, #tpu.memory_space<vmem>>, vector<128x128xbf16>
    %c0_8 = arith.constant 0 : index
    %c0_9 = arith.constant 0 : index
    %5 = vector.load %arg8[%c0_8, %c0_9] : memref<1x128xf32, #tpu.memory_space<vmem>>, vector<1x128xf32>
    %6 = tpu.iota {dimensions = array<i32: 1>} : vector<32x128xi32>
    %c64_i32 = arith.constant 64 : i32
    %7 = vector.broadcast %c64_i32 : i32 to vector<32x128xi32>
    %8 = arith.cmpi slt, %6, %7 : vector<32x128xi32>
    %c0_10 = arith.constant 0 : index
    %c0_11 = arith.constant 0 : index
    %c0_12 = arith.constant 0 : index
    %c0_13 = arith.constant 0 : index
    %9 = vector.load %arg3[%c0_10, %c0_11, %c0_12, %c0_13] : memref<1x1x64x64xf32, #tpu.memory_space<vmem>>, vector<1x1x32x64xf32>
    %10 = vector.shape_cast %9 : vector<1x1x32x64xf32> to vector<32x64xf32>
    %11 = arith.truncf %10 : vector<32x64xf32> to vector<32x64xbf16>
    %cst = arith.constant dense<0.000000e+00> : vector<32x256xf32>
    %12 = tpu.matmul %11, %2, %cst {dimension_numbers = #tpu.dot_dimension_numbers<[1], [0], [0], [1], [0, 0, 1, 1], [], []>} : vector<32x64xbf16>, vector<64x256xbf16>, vector<32x256xf32> -> vector<32x256xf32>
    %13 = vector.broadcast %3 : vector<1x256xf32> to vector<32x256xf32>
    %14 = arith.addf %12, %13 : vector<32x256xf32>
    %15 = vector.extract_strided_slice %14 {offsets = [0, 0], sizes = [32, 128], strides = [1, 1]} : vector<32x256xf32> to vector<32x128xf32>
    %16 = vector.extract_strided_slice %14 {offsets = [0, 128], sizes = [32, 128], strides = [1, 1]} : vector<32x256xf32> to vector<32x128xf32>
    %cst_14 = arith.constant 5.000000e-01 : f32
    %17 = vector.broadcast %cst_14 : f32 to vector<32x128xf32>
    %18 = arith.mulf %17, %16 : vector<32x128xf32>
    %cst_15 = arith.constant 0.707106769 : f32
    %19 = vector.broadcast %cst_15 : f32 to vector<32x128xf32>
    %20 = arith.mulf %16, %19 : vector<32x128xf32>
    %21 = math.erf %20 : vector<32x128xf32>
    %cst_16 = arith.constant 1.000000e+00 : f32
    %22 = vector.broadcast %cst_16 : f32 to vector<32x128xf32>
    %23 = arith.addf %22, %21 : vector<32x128xf32>
    %24 = arith.mulf %18, %23 : vector<32x128xf32>
    %25 = arith.truncf %15 : vector<32x128xf32> to vector<32x128xbf16>
    %cst_17 = arith.constant dense<0.000000e+00> : vector<32x128xf32>
    %26 = tpu.matmul %25, %1, %cst_17 {dimension_numbers = #tpu.dot_dimension_numbers<[1], [1], [0], [0], [0, 0, 1, 0], [], []>} : vector<32x128xbf16>, vector<128x128xbf16>, vector<32x128xf32> -> vector<32x128xf32>
    %cst_18 = arith.constant -1.000000e+30 : f32
    %27 = vector.broadcast %cst_18 : f32 to vector<32x128xf32>
    %28 = arith.select %8, %26, %27 : vector<32x128xi1>, vector<32x128xf32>
    %cst_19 = arith.constant dense<0xFF800000> : vector<32xf32>
    %29 = vector.multi_reduction <maximumf>, %28, %cst_19 [1] : vector<32x128xf32> to vector<32xf32>
    %30 = vector.shape_cast %29 : vector<32xf32> to vector<32x1xf32>
    %31 = vector.broadcast %30 : vector<32x1xf32> to vector<32x128xf32>
    %32 = arith.subf %28, %31 : vector<32x128xf32>
    %33 = math.exp %32 : vector<32x128xf32>
    %cst_20 = arith.constant dense<0.000000e+00> : vector<32xf32>
    %34 = vector.multi_reduction <add>, %33, %cst_20 [1] : vector<32x128xf32> to vector<32xf32>
    %35 = vector.shape_cast %34 : vector<32xf32> to vector<32x1xf32>
    %36 = arith.truncf %33 : vector<32x128xf32> to vector<32x128xbf16>
    %cst_21 = arith.constant dense<0.000000e+00> : vector<32x128xf32>
    %37 = tpu.matmul %36, %1, %cst_21 {dimension_numbers = #tpu.dot_dimension_numbers<[1], [0], [0], [1], [0, 0, 1, 1], [], []>} : vector<32x128xbf16>, vector<128x128xbf16>, vector<32x128xf32> -> vector<32x128xf32>
    %38 = tpu.reciprocal %35 {approx = true} : vector<32x1xf32> -> vector<32x1xf32>
    %39 = vector.broadcast %38 : vector<32x1xf32> to vector<32x128xf32>
    %40 = arith.mulf %37, %39 : vector<32x128xf32>
    %41 = arith.mulf %40, %24 : vector<32x128xf32>
    %42 = arith.truncf %41 : vector<32x128xf32> to vector<32x128xbf16>
    %cst_22 = arith.constant dense<0.000000e+00> : vector<32x128xf32>
    %43 = tpu.matmul %42, %4, %cst_22 {dimension_numbers = #tpu.dot_dimension_numbers<[1], [0], [0], [1], [0, 0, 1, 1], [], []>} : vector<32x128xbf16>, vector<128x128xbf16>, vector<32x128xf32> -> vector<32x128xf32>
    %44 = vector.broadcast %5 : vector<1x128xf32> to vector<32x128xf32>
    %45 = arith.addf %43, %44 : vector<32x128xf32>
    %c0_23 = arith.constant 0 : index
    %c0_24 = arith.constant 0 : index
    %c0_25 = arith.constant 0 : index
    %c0_26 = arith.constant 0 : index
    %46 = vector.load %arg9[%c0_23, %c0_24, %c0_25, %c0_26] : memref<1x1x64x128xf32, #tpu.memory_space<vmem>>, vector<1x1x32x128xf32>
    %47 = vector.shape_cast %46 : vector<1x1x32x128xf32> to vector<32x128xf32>
    %48 = vector.shape_cast %45 : vector<32x128xf32> to vector<1x1x32x128xf32>
    tpu.vector_store %arg9[%c0_23, %c0_24, %c0_25, %c0_26], %48 {strides = array<i32>} : memref<1x1x64x128xf32, #tpu.memory_space<vmem>>, vector<1x1x32x128xf32>,
    %c0_27 = arith.constant 0 : index
    %c0_28 = arith.constant 0 : index
    %c32 = arith.constant 32 : index
    %c0_29 = arith.constant 0 : index
    %49 = vector.load %arg3[%c0_27, %c0_28, %c32, %c0_29] : memref<1x1x64x64xf32, #tpu.memory_space<vmem>>, vector<1x1x32x64xf32>
    %50 = vector.shape_cast %49 : vector<1x1x32x64xf32> to vector<32x64xf32>
    %51 = arith.truncf %50 : vector<32x64xf32> to vector<32x64xbf16>
    %cst_30 = arith.constant dense<0.000000e+00> : vector<32x256xf32>
    %52 = tpu.matmul %51, %2, %cst_30 {dimension_numbers = #tpu.dot_dimension_numbers<[1], [0], [0], [1], [0, 0, 1, 1], [], []>} : vector<32x64xbf16>, vector<64x256xbf16>, vector<32x256xf32> -> vector<32x256xf32>
    %53 = vector.broadcast %3 : vector<1x256xf32> to vector<32x256xf32>
    %54 = arith.addf %52, %53 : vector<32x256xf32>
    %55 = vector.extract_strided_slice %54 {offsets = [0, 0], sizes = [32, 128], strides = [1, 1]} : vector<32x256xf32> to vector<32x128xf32>
    %56 = vector.extract_strided_slice %54 {offsets = [0, 128], sizes = [32, 128], strides = [1, 1]} : vector<32x256xf32> to vector<32x128xf32>
    %cst_31 = arith.constant 5.000000e-01 : f32
    %57 = vector.broadcast %cst_31 : f32 to vector<32x128xf32>
    %58 = arith.mulf %57, %56 : vector<32x128xf32>
    %cst_32 = arith.constant 0.707106769 : f32
    %59 = vector.broadcast %cst_32 : f32 to vector<32x128xf32>
    %60 = arith.mulf %56, %59 : vector<32x128xf32>
    %61 = math.erf %60 : vector<32x128xf32>
    %cst_33 = arith.constant 1.000000e+00 : f32
    %62 = vector.broadcast %cst_33 : f32 to vector<32x128xf32>
    %63 = arith.addf %62, %61 : vector<32x128xf32>
    %64 = arith.mulf %58, %63 : vector<32x128xf32>
    %65 = arith.truncf %55 : vector<32x128xf32> to vector<32x128xbf16>
    %cst_34 = arith.constant dense<0.000000e+00> : vector<32x128xf32>
    %66 = tpu.matmul %65, %1, %cst_34 {dimension_numbers = #tpu.dot_dimension_numbers<[1], [1], [0], [0], [0, 0, 1, 0], [], []>} : vector<32x128xbf16>, vector<128x128xbf16>, vector<32x128xf32> -> vector<32x128xf32>
    %cst_35 = arith.constant -1.000000e+30 : f32
    %67 = vector.broadcast %cst_35 : f32 to vector<32x128xf32>
    %68 = arith.select %8, %66, %67 : vector<32x128xi1>, vector<32x128xf32>
    %cst_36 = arith.constant dense<0xFF800000> : vector<32xf32>
    %69 = vector.multi_reduction <maximumf>, %68, %cst_36 [1] : vector<32x128xf32> to vector<32xf32>
    %70 = vector.shape_cast %69 : vector<32xf32> to vector<32x1xf32>
    %71 = vector.broadcast %70 : vector<32x1xf32> to vector<32x128xf32>
    %72 = arith.subf %68, %71 : vector<32x128xf32>
    %73 = math.exp %72 : vector<32x128xf32>
    %cst_37 = arith.constant dense<0.000000e+00> : vector<32xf32>
    %74 = vector.multi_reduction <add>, %73, %cst_37 [1] : vector<32x128xf32> to vector<32xf32>
    %75 = vector.shape_cast %74 : vector<32xf32> to vector<32x1xf32>
    %76 = arith.truncf %73 : vector<32x128xf32> to vector<32x128xbf16>
    %cst_38 = arith.constant dense<0.000000e+00> : vector<32x128xf32>
    %77 = tpu.matmul %76, %1, %cst_38 {dimension_numbers = #tpu.dot_dimension_numbers<[1], [0], [0], [1], [0, 0, 1, 1], [], []>} : vector<32x128xbf16>, vector<128x128xbf16>, vector<32x128xf32> -> vector<32x128xf32>
    %78 = tpu.reciprocal %75 {approx = true} : vector<32x1xf32> -> vector<32x1xf32>
    %79 = vector.broadcast %78 : vector<32x1xf32> to vector<32x128xf32>
    %80 = arith.mulf %77, %79 : vector<32x128xf32>
    %81 = arith.mulf %80, %64 : vector<32x128xf32>
    %82 = arith.truncf %81 : vector<32x128xf32> to vector<32x128xbf16>
    %cst_39 = arith.constant dense<0.000000e+00> : vector<32x128xf32>
    %83 = tpu.matmul %82, %4, %cst_39 {dimension_numbers = #tpu.dot_dimension_numbers<[1], [0], [0], [1], [0, 0, 1, 1], [], []>} : vector<32x128xbf16>, vector<128x128xbf16>, vector<32x128xf32> -> vector<32x128xf32>
    %84 = vector.broadcast %5 : vector<1x128xf32> to vector<32x128xf32>
    %85 = arith.addf %83, %84 : vector<32x128xf32>
    %c0_40 = arith.constant 0 : index
    %c0_41 = arith.constant 0 : index
    %c32_42 = arith.constant 32 : index
    %c0_43 = arith.constant 0 : index
    %86 = vector.load %arg9[%c0_40, %c0_41, %c32_42, %c0_43] : memref<1x1x64x128xf32, #tpu.memory_space<vmem>>, vector<1x1x32x128xf32>
    %87 = vector.shape_cast %86 : vector<1x1x32x128xf32> to vector<32x128xf32>
    %88 = vector.shape_cast %85 : vector<32x128xf32> to vector<1x1x32x128xf32>
    tpu.vector_store %arg9[%c0_40, %c0_41, %c32_42, %c0_43], %88 {strides = array<i32>} : memref<1x1x64x128xf32, #tpu.memory_space<vmem>>, vector<1x1x32x128xf32>,
    return
  }
  func.func @transform_0(%arg0: i32, %arg1: i32, %arg2: i32) -> (i32, i32, i32, i32) {
    %c0_i32 = arith.constant 0 : i32
    %c0_i32_0 = arith.constant 0 : i32
    return %arg1, %arg0, %arg2, %c0_i32 : i32, i32, i32, i32
  }
  func.func @transform_1(%arg0: i32, %arg1: i32, %arg2: i32) -> (i32, i32, i32) {
    %c0_i32 = arith.constant 0 : i32
    %c0_i32_0 = arith.constant 0 : i32
    %c0_i32_1 = arith.constant 0 : i32
    return %arg0, %c0_i32, %c0_i32_0 : i32, i32, i32
  }
  func.func @transform_2(%arg0: i32, %arg1: i32, %arg2: i32) -> (i32, i32) {
    %c0_i32 = arith.constant 0 : i32
    %c0_i32_0 = arith.constant 0 : i32
    %c0_i32_1 = arith.constant 0 : i32
    return %c0_i32, %c0_i32_0 : i32, i32
  }
  func.func @transform_3(%arg0: i32, %arg1: i32, %arg2: i32) -> (i32, i32) {
    %c0_i32 = arith.constant 0 : i32
    %c0_i32_0 = arith.constant 0 : i32
    %c0_i32_1 = arith.constant 0 : i32
    return %c0_i32, %c0_i32_0 : i32, i32
  }
  func.func @transform_4(%arg0: i32, %arg1: i32, %arg2: i32) -> (i32, i32) {
    %c0_i32 = arith.constant 0 : i32
    %c0_i32_0 = arith.constant 0 : i32
    %c0_i32_1 = arith.constant 0 : i32
    return %c0_i32, %c0_i32_0 : i32, i32
  }
  func.func @transform_5(%arg0: i32, %arg1: i32, %arg2: i32) -> (i32, i32) {
    %c0_i32 = arith.constant 0 : i32
    %c0_i32_0 = arith.constant 0 : i32
    %c0_i32_1 = arith.constant 0 : i32
    return %c0_i32, %c0_i32_0 : i32, i32
  }
  func.func @transform_6(%arg0: i32, %arg1: i32, %arg2: i32) -> (i32, i32, i32, i32) {
    %c0_i32 = arith.constant 0 : i32
    %c0_i32_0 = arith.constant 0 : i32
    return %arg1, %arg0, %arg2, %c0_i32 : i32, i32, i32, i32
  }
}

</mosaic_0001>

<bundles_post_ra>
// kernel: tpu_custom_call.1
= control target key start
LH: loop header
LB: loop body
LE: loop exit
PB: predicated region body
PF: predicated region fallthrough
CT: control target
= control target key end

     0   :  { %s2737_s0 = inlined_call_operand.hbm [shape: f32[2,4,64,64], index: 0, kind: input, shape index: {}]   ;;  %s2738_s1 = inlined_call_operand.hbm [shape: bf16[4,128,128], index: 1, kind: input, shape index: {}]   ;;  %s2739_s2 = inlined_call_operand.hbm [shape: bf16[64,256], index: 2, kind: input, shape index: {}]   ;;  %s2740_s3 = inlined_call_operand.vmem [shape: f32[1,256], index: 3, kind: input, shape index: {}]   ;;  %s2741_s4 = inlined_call_operand.hbm [shape: bf16[128,128], index: 4, kind: input, shape index: {}]   ;;  %s2742_s5 = inlined_call_operand.vmem [shape: f32[1,128], index: 5, kind: input, shape index: {}]   ;;  %s2743_s6 = inlined_call_operand.hbm [shape: f32[2,4,64,128], index: 6, kind: output, shape index: {}]  }
   0x1   :  { %2761 = sst [smem:[#allocation23_spill]] %s2739_s2 }
   0x2   :  { %2762 = sst [smem:[#allocation24_spill]] %s2741_s4 }
   0x3   :  { %2763 = sst [smem:[#allocation25_spill]] %s2743_s6 }
   0x4   :  { %11 = vsyncpa [#allocation3], 0 }
   0x5   :  { %13 = vsyncpa [#allocation3 + $0x1], 0 }
   0x6   :  { %14 = vsyncpa [#allocation6], 0 }
   0x7   :  { %16 = vsyncpa [#allocation6 + $0x1], 0 }
   0x8   :  { %17 = vsyncpa [#allocation9], 0 }
   0x9   :  { %18 = vsyncpa [#allocation4], 0 }
   0xa   :  { %20 = vsyncpa [#allocation4 + $0x1], 0  ;;  %s2046_s21 = smov 0   ;;  %s2048_s22 = smov 0  }
   0xb   :  { %s2050_s23 = smov 0   ;;  %s2052_s24 = smov 0  }
   0xc   :  { %s2054_s25 = smov 0   ;;  %s2056_s26 = smov 0  }
   0xd   :  { %s2058_s27 = smov 0   ;;  %s2060_s28 = smov 0  }
   0xe   :  { %s2062_s29 = smov 0   ;;  %s2064_s30 = smov 0  }
   0xf   :  { %s2066_s7 = smov 0  }
  0x10 LB: > { %2764 = sst [smem:[#allocation16_spill]] %s1969_s24  ;;  %s2100_s8 = sadd.s32 4294967295, %s1997_s7   ;;  %s1997_s7 = sphi %s2066_s7, %s26_s7   ;;  %s1993_s30 = sphi %s2064_s30, %s2816_s30   ;;  %s1989_s29 = sphi %s2062_s29, %s2815_s29   ;;  %s1985_s28 = sphi %s2060_s28, %s2814_s28   ;;  %s1981_s27 = sphi %s2058_s27, %s2813_s27   ;;  %s1977_s26 = sphi %s2056_s26, %s2812_s26   ;;  %s1973_s25 = sphi %s2054_s25, %s2811_s25   ;;  %s1969_s24 = sphi %s2052_s24, %s2810_s24   ;;  %s1965_s23 = sphi %s2050_s23, %s2809_s23   ;;  %s1961_s22 = sphi %s2048_s22, %s2808_s22   ;;  %s1957_s21 = sphi %s2046_s21, %s2807_s21  }
  0x11   : > { %2765 = sst [smem:[#allocation17_spill]] %s1981_s27  ;;  %s1302_s9 = sadd.s32 4294967294, %s1997_s7  }
  0x12   : > { %2766 = sst [smem:[#allocation18_spill]] %s1985_s28  ;;  %p69_p0 = scmp.ne.s32.totalorder %s1973_s25, %s1969_s24 }
  0x13   : > { %p2746_p1 = scmp.eq.s32.totalorder %s2100_s8, 0  ;;  %p95_p2 = scmp.ne.s32.totalorder %s1961_s22, %s1957_s21 }
  0x14   : > { %p213_p5 = scmp.eq.s32.totalorder %s1302_s9, 7  ;;  %p1303_p7 = scmp.ge.s32.totalorder %s1997_s7, 1 }
  0x15   : > { %p2110_p4 = por %p2746_p1, %p69_p0  ;;  %p2116_p6 = por %p95_p2, %p2746_p1 }
  0x16   : > { %p2121_p8 = por %p213_p5, %p69_p0  ;;  %p220_p9 = scmp.lt.s32.totalorder %s1997_s7, 9 }
  0x17   : > { %s2767_s10 = scalar_select %p2110_p4, 1, 0 }
  0x18   : > { %s2768_s11 = scalar_select %p2116_p6, 1, 0 }
  0x19   : > { %s2769_s12 = scalar_select %p2121_p8, 1, 0 }
  0x1a   : > { %p2126_p10 = pnand %p1303_p7, %p220_p9  ;;  %s1999_s14 = smov [#allocation7]  }
  0x1b   : > { %2770 = sst [smem:[#allocation19_spill]] %s2769_s12  ;;  %s232_s15 = sshll.u32 %s1999_s14, 4  ;;  %s233_s15 = int_to_ptr.vmem [resolvable:$true] %s232_s15 }
  0x1c   : > { %s2771_s13 = scalar_select %p2126_p10, 1, 0 }
  0x1d   : > { %p1550_p11 = pneg %p2126_p10  ;;  %s2000_s17 = smov [#allocation8]  }
  0x1e   : > { %s248_s18 = sshll.u32 %s2000_s17, 4  ;;  %s2773_s2 = sld [smem:[#allocation23_spill]]  ;;  %s2138_s18 = int_to_ptr.vmem [resolvable:$true] %s248_s18 }
  0x1f   : > { %p2134_p12 = pnand %p1550_p11, %p2746_p1 }
  0x21   : > { %p1749_p0 = pneg %p2134_p12 }
  0x24   : > { %s1747_s21 = scalar_lea.hbm %s2773_s2, 1024 }
  0x25   : > { %p1748_p13 = scmp.ne.s32.totalorder %s2773_s2, %s1747_s21  ;;  %p1754_p7 = scmp.lt.u32.totalorder %s1747_s21, %s2773_s2 }
  0x27   : > { %p1750_p2 = pnand %p1749_p0, %p1748_p13 }
  0x29   : > { %p1751_p5 = pneg %p1750_p2 }
  0x2b   : > { %p1756_p9 = pnand %p1754_p7, %p1751_p5 }
  0x2d   : > { %1759 = shalt.err (!%p1756_p9)
}
  0x2e   : > { %s1760_s17 = scalar_lea.vmem %s233_s15, 1024  ;;  %p1768_p8 = scmp.lt.s32.totalorder %s233_s15, %s233_s15 }
  0x2f   : > { %p1761_p11 = scmp.ne.s32.totalorder %s233_s15, %s1760_s17  ;;  %p1769_p6 = scmp.lt.s32.totalorder %s1760_s17, %s1760_s17 }
  0x31   : > { %p1763_p1 = pnand %p1761_p11, %p1749_p0  ;;  %p1770_p4 = por %p1769_p6, %p1768_p8 }
  0x33   : > { %p1764_p3 = pneg %p1763_p1 }
  0x35   : > { %p1771_p10 = pnand %p1770_p4, %p1764_p3 }
  0x37   : > { %1774 = shalt.err (!%p1771_p10)
}
  0x38   : > { %s2753_s19 = smov 128   ;;  %s2754_s20 = smov 8  }
  0x39   : > { %1553 = dma.hbm_to_vmem [thread:$0]  (!%p2134_p12), %s2773_s2, 1024, %s233_s15, [#allocation6], %s2753_s19, %s2753_s19, %s2754_s20  }
  0x3a   : > { %s2774_s4 = sld [smem:[#allocation24_spill]] }
  0x40   : > { %s1775_s14 = scalar_lea.hbm %s2774_s4, 1024 }
  0x41   : > { %p1776_p1 = scmp.ne.s32.totalorder %s2774_s4, %s1775_s14  ;;  %p1782_p6 = scmp.lt.u32.totalorder %s1775_s14, %s2774_s4 }
  0x43   : > { %p1778_p3 = pnand %p1776_p1, %p1749_p0 }
  0x45   : > { %p1779_p4 = pneg %p1778_p3 }
  0x47   : > { %p1784_p8 = pnand %p1782_p6, %p1779_p4 }
  0x49   : > { %1787 = shalt.err (!%p1784_p8)
}
  0x4a   : > { %s1788_s15 = scalar_lea.vmem %s2138_s18, 1024  ;;  %p1796_p5 = scmp.lt.s32.totalorder %s2138_s18, %s2138_s18 }
  0x4b   : > { %p1789_p10 = scmp.ne.s32.totalorder %s2138_s18, %s1788_s15  ;;  %p1797_p7 = scmp.lt.s32.totalorder %s1788_s15, %s1788_s15 }
  0x4d   : > { %p1791_p13 = pnand %p1789_p10, %p1749_p0  ;;  %p1798_p9 = por %p1797_p7, %p1796_p5 }
  0x4f   : > { %p1792_p2 = pneg %p1791_p13 }
  0x51   : > { %p1799_p11 = pnand %p1798_p9, %p1792_p2 }
  0x53   : > { %1802 = shalt.err (!%p1799_p11)
}
  0x54   : > { %s2751_s6 = smov 64   ;;  %s2752_s27 = smov 4  }
  0x55   : > { %1556 = dma.hbm_to_vmem [thread:$0]  (!%p2134_p12), %s2774_s4, 1024, %s2138_s18, [#allocation9], %s2751_s6, %s2751_s6, %s2752_s27  }
  0x56   : > { %s41_s12 = sadd.s32 1, %s1989_s29  ;;  %s45_s21 = sadd.s32 1, %s1993_s30 }
  0x57   : > { %p43_p0 = scmp.ge.s32.totalorder %s41_s12, 2  ;;  %s56_s9 = sadd.s32 1, %s1977_s26 }
  0x58   : > { %p63_p1 = scmp.ne.s32.totalorder %s1977_s26, %s1973_s25  ;;  %p2760_p3 = scmp.eq.s32.totalorder %s1997_s7, 0 }
  0x59   : > { %s2818_s12 = smov (%p43_p0, %s41_s12), 0  ;;  %s2820_s21 = smov (!%p43_p0, %s45_s21), %s1993_s30 }
  0x5a   : > { %2775 = sst [smem:[#allocation20_spill]] %s2818_s12  ;;  %s49_s16 = ssub.s32 %s1989_s29, %s2818_s12 }
  0x5b   : > { %p2206_p4 = por %p2760_p3, %p63_p1  ;;  %p47_p12 = scmp.ge.s32.totalorder %s2820_s21, 4 }
  0x5c   : > { %p2777_p6 = scmp.eq.s32.totalorder %s2100_s8, 7  ;;  %p2759_p10 = scmp.lt.s32.totalorder %s1997_s7, 8 }
  0x5d   : > { %s265_s17 = sand.u32 1, %s1977_s26   ;;  %s2822_s21 = smov (%p47_p12, %s2820_s21), 0 }
  0x5e   : > { %p2212_p8 = por %p2777_p6, %p63_p1  ;;  %2780 = sst [smem:[#allocation22_spill]] %s2822_s21 }
  0x5f   : > { %s1307_s15 = sshll.u32 %s265_s17, 6  ;;  %s2222_s28 = ssub.s32 %s1993_s30, %s2822_s21 }
  0x60   : > { %s2778_s18 = scalar_select %p2212_p8, 1, 0 }
  0x61   : > { %s51_s24 = sor.u32 %s2222_s28, %s49_s16  ;;  %s1308_s6 = sshll.u32 %s1993_s30, 3 }
  0x62   : > { %2779 = sst [smem:[#allocation21_spill]] %s2778_s18  ;;  %p54_p2 = scmp.eq.s32.totalorder %s51_s24, 0 }
  0x63   : > { %s1309_s27 = sshll.u32 %s1989_s29, 5  ;;  %s269_s19 = scalar_lea.vmem [#allocation2], %s1307_s15 }
  0x64   : > { %s280_s20 = sshll.u32 %s269_s19, 4  ;;  %s277_s4 = sadd.s32 %s1309_s27, %s1308_s6  ;;  %s2231_s20 = int_to_ptr.vmem [resolvable:$true] %s280_s20 }
  0x65   : > { %s2229_s2 = scalar_select %p54_p2, %s1977_s26, %s56_s9  }
  0x66   : > { %s1310_s12 = sshll.u32 %s277_s4, 7  ;;  %p2237_p5 = pnand %p2759_p10, %p2206_p4 }
  0x67   : > { %s2244_s24 = scalar_lea.hbm %s2737_s0, %s1310_s12  ;;  %s2246_s19 = scalar_lea.sflag [#allocation3], %s265_s17 }
  0x68   : > { %s1803_s4 = scalar_lea.hbm %s2244_s24, 1024  ;;  %p1805_p9 = pneg %p2237_p5 }
  0x69   : > { %p1804_p7 = scmp.ne.s32.totalorder %s2244_s24, %s1803_s4  ;;  %s1808_s9 = scalar_lea.hbm %s2737_s0, 8192 }
  0x6a   : > { %p1809_p1 = scmp.lt.u32.totalorder %s2244_s24, %s2737_s0  ;;  %p1810_p4 = scmp.lt.u32.totalorder %s1808_s9, %s1803_s4 }
  0x6b   : > { %p1806_p11 = pnand %p1805_p9, %p1804_p7  ;;  %p1812_p6 = scmp.lt.u32.totalorder %s1803_s4, %s2244_s24 }
  0x6c   : > { %p1811_p12 = por %p1810_p4, %p1809_p1 }
  0x6d   : > { %p1807_p0 = pneg %p1806_p11 }
  0x6e   : > { %p1813_p2 = por %p1812_p6, %p1811_p12 }
  0x70   : > { %p1814_p10 = pnand %p1813_p2, %p1807_p0 }
  0x72   : > { %1817 = shalt.err (!%p1814_p10)
}
  0x73   : > { %s1818_s18 = scalar_lea.vmem %s2231_s20, 1024  ;;  %s2005_s17 = smov [#allocation2]  }
  0x74   : > { %p1819_p7 = scmp.ne.s32.totalorder %s2231_s20, %s1818_s18  ;;  %s1823_s15 = sshll.u32 %s2005_s17, 4  ;;  %s1824_s15 = int_to_ptr.vmem [resolvable:$false] %s1823_s15 }
  0x75   : > { %s1825_s16 = scalar_lea.vmem %s1824_s15, 2048  ;;  %p1826_p13 = scmp.lt.s32.totalorder %s2231_s20, %s1824_s15 }
  0x76   : > { %p1821_p11 = pnand %p1819_p7, %p1805_p9  ;;  %p1827_p1 = scmp.lt.s32.totalorder %s1825_s16, %s1818_s18 }
  0x78   : > { %p1822_p3 = pneg %p1821_p11  ;;  %p1828_p4 = por %p1827_p1, %p1826_p13 }
  0x7a   : > { %p1829_p12 = pnand %p1828_p4, %p1822_p3 }
  0x7c   : > { %1832 = shalt.err (!%p1829_p12)
}
  0x7d   : > { %s2782_s4 = smov 8   ;;  %s2783_s6 = smov 128  }
  0x7e   : > { %1560 = dma.hbm_to_vmem [thread:$0]  (!%p2237_p5), %s2244_s24, 1024, %s2231_s20, %s2246_s19, %s2783_s6, %s2783_s6, %s2782_s4  }
  0x7f   : > { %s82_s27 = sadd.s32 1, %s1965_s23  ;;  %p89_p3 = scmp.ne.s32.totalorder %s1965_s23, %s1961_s22 }
  0x80   : > { %p2784_p10 = scmp.eq.s32.totalorder %s2222_s28, 0  ;;  %p2785_p13 = scmp.eq.s32.totalorder %s1997_s7, 0 }
  0x81   : > { %s290_s9 = sand.u32 1, %s1997_s7   ;;  %s292_s12 = sand.u32 1, %s1965_s23  }
  0x82   : > { %s2283_s21 = scalar_select %p2784_p10, %s1965_s23, %s82_s27  }
  0x83   : > { %p91_p9 = por %p89_p3, %p2785_p13  ;;  %s1311_s14 = sshll.u32 %s292_s12, 6 }
  0x84   : > { %s1355_s18 = sshll.u32 %s1993_s30, 10  ;;  %s294_s20 = scalar_lea.vmem [#allocation5], %s1311_s14 }
  0x85   : > { %s2293_s16 = scalar_lea.hbm %s2738_s1, %s1355_s18  ;;  %s301_s24 = sshll.u32 %s294_s20, 4  ;;  %s2301_s24 = int_to_ptr.vmem [resolvable:$true] %s301_s24 }
  0x86   : > { %p2786_p5 = scmp.lt.s32.totalorder %s1997_s7, 8  ;;  %s2303_s19 = scalar_lea.sflag [#allocation6], %s290_s9 }
  0x87   : > { %s1833_s4 = scalar_lea.hbm %s2293_s16, 1024  ;;  %s1838_s12 = scalar_lea.hbm %s2738_s1, 4096 }
  0x88   : > { %p2297_p0 = pnand %p2786_p5, %p91_p9  ;;  %p1834_p6 = scmp.ne.s32.totalorder %s2293_s16, %s1833_s4 }
  0x89   : > { %p1839_p1 = scmp.lt.u32.totalorder %s2293_s16, %s2738_s1  ;;  %p1840_p4 = scmp.lt.u32.totalorder %s1838_s12, %s1833_s4 }
  0x8a   : > { %p1835_p2 = pneg %p2297_p0  ;;  %p1842_p3 = scmp.lt.u32.totalorder %s1833_s4, %s2293_s16 }
  0x8b   : > { %p1841_p12 = por %p1840_p4, %p1839_p1 }
  0x8c   : > { %p1836_p7 = pnand %p1835_p2, %p1834_p6 }
  0x8d   : > { %p1843_p10 = por %p1842_p3, %p1841_p12 }
  0x8e   : > { %p1837_p11 = pneg %p1836_p7 }
  0x90   : > { %p1844_p13 = pnand %p1843_p10, %p1837_p11 }
  0x92   : > { %1847 = shalt.err (!%p1844_p13)
}
  0x93   : > { %s1848_s9 = scalar_lea.vmem %s2301_s24, 1024  ;;  %s2006_s17 = smov [#allocation5]  }
  0x94   : > { %p1849_p9 = scmp.ne.s32.totalorder %s2301_s24, %s1848_s9  ;;  %s1853_s15 = sshll.u32 %s2006_s17, 4  ;;  %s1854_s15 = int_to_ptr.vmem [resolvable:$false] %s1853_s15 }
  0x95   : > { %s1855_s20 = scalar_lea.vmem %s1854_s15, 2048  ;;  %p1856_p7 = scmp.lt.s32.totalorder %s2301_s24, %s1854_s15 }
  0x96   : > { %p1851_p5 = pnand %p1849_p9, %p1835_p2  ;;  %p1857_p1 = scmp.lt.s32.totalorder %s1855_s20, %s1848_s9 }
  0x98   : > { %p1852_p6 = pneg %p1851_p5  ;;  %p1858_p4 = por %p1857_p1, %p1856_p7 }
  0x9a   : > { %p1859_p12 = pnand %p1858_p4, %p1852_p6 }
  0x9c   : > { %1862 = shalt.err (!%p1859_p12)
}
  0x9d   : > { %s2788_s4 = smov 4   ;;  %s2789_s6 = smov 64  }
  0x9e   : > { %1563 = dma.hbm_to_vmem [thread:$0]  (!%p2297_p0), %s2293_s16, 1024, %s2301_s24, %s2303_s19, %s2789_s6, %s2789_s6, %s2788_s4  }
  0x9f   : > { %p2790_p2 = scmp.ne.s32.totalorder %s2771_s13, 0 }
  0xa0   : > { %s2337_s27 = sand.u32 (!%p2790_p2), 1, %s1973_s25   ;;  %p2791_p11 = scmp.ne.s32.totalorder (!%p2790_p2), %s2767_s10, 0 }
  0xa1   : > { %313 = sbr.rel (%p2790_p2) target bundleno = 1920 (0x780), region = 44  ;;  %s1315_s12 = sshll.u32 (!%p2790_p2), %s2337_s27, 6 }
  0xa2   : > { %s316_s14 = scalar_lea.sflag (!%p2790_p2), [#allocation3], %s2337_s27  ;;  %s2343_s28 = scalar_lea.vmem (!%p2790_p2), [#allocation2], %s1315_s12 }
  0xa8   : > { %1936 = dma.done.wait (%p2791_p11), %s316_s14, 1024  }
  0xa9   : > { %1938 = vsyncadd (%p2791_p11), %s316_s14, 4294966272  ;;  %s324_s13 = sand.u32 1, %s2100_s8   ;;  %s326_s16 = sand.u32 1, %s1961_s22  }
  0xaa   : > { %s1316_s24 = sshll.u32 %s326_s16, 6  ;;  %s325_s19 = scalar_lea.sflag [#allocation6], %s324_s13 }
  0xab   : > { %s2351_s18 = scalar_lea.vmem [#allocation5], %s1316_s24  ;;  %p2792_p0 = scmp.ne.s32.totalorder %s2768_s11, 0 }
  0xad   : > { %1940 = dma.done.wait (%p2792_p0), %s325_s19, 1024  }
  0xae   : > { %1942 = vsyncadd (%p2792_p0), %s325_s19, 4294966272  ;;  %p2793_p3 = scmp.eq.s32.totalorder %s2100_s8, 0 }
  0xb0   : > { %1944 = dma.done.wait (%p2793_p3), [#allocation6], 1024   ;;  %p2794_p10 = pmov %p2793_p3 }
  0xb1   : > { %p2795_p13 = pmov %p2793_p3 }
  0xb2   : > { %1946 = vsyncadd (%p2794_p10), [#allocation6], 4294966272 }
  0xb3   : > { %1948 = dma.done.wait (%p2795_p13), [#allocation9], 1024   ;;  %p2796_p9 = pmov %p2793_p3 }
  0xb4   : > { %v2007_v0 = vmov 0   ;;  %v2366_v1 = vld [vmem:[#allocation7 + $0x4] ss:$8 sps:$4 sm:$0xff]   ;;  %v2368_v2 = vld [vmem:[#allocation7] ss:$8 sps:$4 sm:$0xff]   ;;  %vm475_vm0 = vcmask 523264   ;;  %v415_v23 = vlaneseq }
  0xb5   : > { %1950 = vsyncadd (%p2796_p9), [#allocation9], 4294966272  ;;  %514 = vmatprep.mubr.bf16.mxu0 %v2007_v0  ;;  %482 = vmatprep.subr.bf16.mxu0 %v2366_v1  ;;  %v2371_v3 = vld [vmem:[#allocation7 + $0x14] ss:$8 sps:$4 sm:$0xff]   ;;  %v2374_v4 = vld [vmem:[#allocation7 + $0x10] ss:$8 sps:$4 sm:$0xff]  }
  0xb6   : > { %483 = vmatpush1.bf16.msra.mxu0 %v2368_v2  ;;  %v2377_v5 = vld [vmem:[#allocation7 + $0x24] ss:$8 sps:$4 sm:$0xff]   ;;  %v2379_v6 = vld [vmem:[#allocation7 + $0x20] ss:$8 sps:$4 sm:$0xff]   ;;  %v2381_v7 = vld [vmem:[#allocation7 + $0x34] ss:$8 sps:$4 sm:$0xff]  }
  0xb7   : > { %484 = vmatprep.subr.bf16.mxu0 %v2371_v3  ;;  %v2385_v8 = vld [vmem:[%s2351_s18] sm:$0xff]   ;;  %v2389_v9 = vld [vmem:[%s2351_s18 + $0x8] sm:$0xff]   ;;  %v2391_v10 = vld [vmem:[#allocation7 + $0x30] ss:$8 sps:$4 sm:$0xff]   ;;  %v2454_v24 = vshrl.u32 %v415_v23, 7  ;;  %v2486_v42 = vand.u32 127, %v415_v23 }
  0xb8   : > { %1416 = vmatprep.subr.bf16.mxu1 %v2385_v8  ;;  %v418_v11 = vld [vmem:[%s2343_s28] sm:$0xff]  ;;  %v419_v12 = vld [vmem:[%s2343_s28 + $0x8] sm:$0xff]  ;;  %v2401_v13 = vld [vmem:[%s2351_s18 + $0x10] sm:$0xff]   ;;  %s2619_s17 = scalar_lea.vmem [#allocation10], %s1315_s12  ;;  %s2797_s15 = sld [smem:[#allocation18_spill]] }
  0xb9   : > { %1417 = vmatpush3.bf16.xpose.msra.mxu1 %v2385_v8  ;;  %v422_v14 = vpack.c.bf16 %v419_v12, %v418_v11  ;;  %v420_v15 = vld [vmem:[%s2343_s28 + $0x10] sm:$0xff]  ;;  %v421_v16 = vld [vmem:[%s2343_s28 + $0x18] sm:$0xff]  ;;  %v2424_v19 = vld [vmem:[%s2351_s18 + $0x20] sm:$0xff]   ;;  %v427_v25 = vsub.s32 0, %v2454_v24  ;;  %vm417_vm1 = vcmp.lt.s32.totalorder %v2486_v42, 64  ;;  %s2798_s20 = sld [smem:[#allocation17_spill]] }
  0xba   : > { %485 = vmatpush1.bf16.msra.mxu0 %v2374_v4  ;;  %1418 = vmatprep.subr.bf16.mxu1 %v2389_v9  ;;  %v423_v17 = vpack.c.bf16 %v421_v16, %v420_v15  ;;  %v2414_v18 = vld [vmem:[%s2351_s18 + $0x18] sm:$0xff]   ;;  %v2431_v20 = vld [vmem:[%s2351_s18 + $0x28] sm:$0xff]   ;;  %v2436_v21 = vld [vmem:[%s2351_s18 + $0x30] sm:$0xff]   ;;  %s1162_s14 = sshll.u32 %s2619_s17, 4  ;;  %s2800_s19 = sld [smem:[#allocation25_spill]]  ;;  %s2662_s14 = int_to_ptr.vmem [resolvable:$true] %s1162_s14 }
  0xbb   : > { %486 = vmatprep.subr.bf16.mxu0 %v2377_v5  ;;  %v2447_v22 = vld [vmem:[%s2351_s18 + $0x38] sm:$0xff]   ;;  %v2460_v26 = vld [vmem:[%s2740_s3] sm:$0x3]  ;;  %v859_v52 = vld [vmem:[%s2343_s28 + $0x28] sm:$0xff]  ;;  %s1145_s8 = scalar_lea.sflag [#allocation4], %s2337_s27  ;;  %s1863_s10 = scalar_lea.vmem %s2662_s14, 1024 }
  0xbc   : > { %v2463_v27 = vrot.slane %v2460_v26, %v427_v25  ;;  %v858_v51 = vld [vmem:[%s2343_s28 + $0x20] sm:$0xff]  ;;  %v860_v54 = vld [vmem:[%s2343_s28 + $0x30] sm:$0xff]  ;;  %v861_v55 = vld [vmem:[%s2343_s28 + $0x38] sm:$0xff]  ;;  %p1864_p5 = scmp.ne.s32.totalorder %s2662_s14, %s1863_s10  ;;  %s2008_s11 = smov [#allocation10]  }
  0xbd   : > { %v862_v53 = vpack.c.bf16 %v859_v52, %v858_v51  ;;  %v863_v56 = vpack.c.bf16 %v861_v55, %v860_v54  ;;  %v2521_v15 = vld [vmem:[#allocation8 + $0x8] sm:$0xff]   ;;  %v2527_v16 = vld [vmem:[#allocation8 + $0x10] sm:$0xff]   ;;  %v2535_v23 = vld [vmem:[#allocation8 + $0x20] sm:$0xff]   ;;  %s1867_s9 = sshll.u32 %s2008_s11, 4  ;;  %s1868_s9 = int_to_ptr.vmem [resolvable:$false] %s1867_s9 }
  0xbe   : > { %487 = vmatpush1.bf16.msra.mxu0 %v2379_v6  ;;  %v2539_v25 = vld [vmem:[#allocation8 + $0x28] sm:$0xff]   ;;  %s1350_s4 = sshll.u32 %s2797_s15, 3  ;;  %p1865_p6 = pnand %p1864_p5, %p2212_p8 }
  0xbf   : > { %488 = vmatprep.subr.bf16.mxu0 %v2381_v7  ;;  %s1351_s6 = sshll.u32 %s2798_s20, 5  ;;  %s1869_s15 = scalar_lea.vmem %s1868_s9, 2048 }
  0xc0   : > { %s1159_s12 = sadd.s32 %s1351_s6, %s1350_s4  ;;  %p1866_p7 = pneg %p1865_p6 }
  0xc1   : > { %1419 = vmatpush3.bf16.xpose.msra.mxu1 %v2389_v9  ;;  %s1352_s28 = sshll.u32 %s1159_s12, 7  ;;  %p1870_p1 = scmp.lt.s32.totalorder %s2662_s14, %s1868_s9 }
  0xc2   : > { %489 = vmatpush1.bf16.msra.mxu0 %v2391_v10  ;;  %1420 = vmatprep.subr.bf16.mxu1 %v2401_v13  ;;  %s2670_s18 = scalar_lea.hbm %s2800_s19, %s1352_s28  ;;  %p1871_p4 = scmp.lt.s32.totalorder %s1869_s15, %s1863_s10 }
  0xc3   : > { %1436 = vmatprep.subr.bf16.mxu0 %v2385_v8 }
  0xc4   : > { %p1872_p12 = por %p1871_p4, %p1870_p1 }
  0xc5   : > { %1328 = vmatmul.mubr.msk.bf16.vlgmr.msra.gmra.mrb[0].mxu0 %vm475_vm0, %v422_v14  ;;  %v2519_v14 = vld [vmem:[#allocation8] sm:$0xff]  }
  0xc6   : > { %524 = vmatprep.mubr.bf16.mxu0 %v2007_v0  ;;  %1437 = vmatpush3.bf16.msra.mxu0 %v2385_v8  ;;  %p1873_p2 = pnand %p1872_p12, %p1866_p7 }
  0xc7   : > { %1438 = vmatprep.subr.bf16.mxu0 %v2389_v9 }
  0xc9   : > { %1421 = vmatpush3.bf16.xpose.msra.mxu1 %v2401_v13 }
  0xca   : > { %1439 = vmatpush3.bf16.msra.mxu0 %v2389_v9  ;;  %1422 = vmatprep.subr.bf16.mxu1 %v2414_v18 }
  0xcb   : > { %1440 = vmatprep.subr.bf16.mxu0 %v2401_v13 }
  0xcd   : > { %1329 = vmatmul.mubr.msk.bf16.gmra.mrb[4].mxu0 %vm475_vm0, %v423_v17  ;;  %v2531_v17 = vld [vmem:[#allocation8 + $0x18] sm:$0xff]  }
  0xce   : > { %1441 = vmatpush3.bf16.msra.mxu0 %v2401_v13 }
  0xcf   : > { %1442 = vmatprep.subr.bf16.mxu0 %v2414_v18 }
  0xd1   : > { %1423 = vmatpush3.bf16.xpose.msra.mxu1 %v2414_v18 }
  0xd2   : > { %1443 = vmatpush3.bf16.msra.mxu0 %v2414_v18  ;;  %1424 = vmatprep.subr.bf16.mxu1 %v2424_v19 }
  0xd3   : > { %1444 = vmatprep.subr.bf16.mxu0 %v2424_v19 }
  0xd6   : > { %1445 = vmatpush3.bf16.msra.mxu0 %v2424_v19 }
  0xd7   : > { %1446 = vmatprep.subr.bf16.mxu0 %v2431_v20 }
  0xd9   : > { %1425 = vmatpush3.bf16.xpose.msra.mxu1 %v2424_v19 }
  0xda   : > { %1447 = vmatpush3.bf16.msra.mxu0 %v2431_v20  ;;  %1426 = vmatprep.subr.bf16.mxu1 %v2431_v20 }
  0xdb   : > { %1448 = vmatprep.subr.bf16.mxu0 %v2436_v21 }
  0xde   : > { %1449 = vmatpush3.bf16.msra.mxu0 %v2436_v21 }
  0xdf   : > { %1450 = vmatprep.subr.bf16.mxu0 %v2447_v22 }
  0xe1   : > { %1427 = vmatpush3.bf16.xpose.msra.mxu1 %v2431_v20 }
  0xe2   : > { %1428 = vmatprep.subr.bf16.mxu1 %v2436_v21  ;;  %1451 = vmatpush3.bf16.msra.mxu0 %v2447_v22 }
  0xe3   : > { %1456 = vmatprep.subr.bf16.mxu0 %v2519_v14 }
  0xe9   : > { %1429 = vmatpush3.bf16.xpose.msra.mxu1 %v2436_v21 }
  0xea   : > { %1430 = vmatprep.subr.bf16.mxu1 %v2447_v22 }
  0xf1   : > { %1431 = vmatpush3.bf16.xpose.msra.mxu1 %v2447_v22 }
  0xf2   : > { %870 = vmatprep.subr.bf16.mxu1 %v2366_v1 }
 0x198   : > { %v516_v28 = vpop.f32.mrb[0].mxu0 }
 0x199   : > { %v2465_v29 = vpop.f32.mrb[1].mxu0  ;;  %v517_v31 = vadd.f32 %v516_v28, %v2463_v27  ;;  %v2543_v28 = vld [vmem:[#allocation8 + $0x30] sm:$0xff]  }
 0x19a   : > { %v520_v30 = vpop.f32.mrb[2].mxu0 }
 0x19b   : > { %v521_v32 = vadd.f32 %v520_v30, %v2463_v27  ;;  %v2469_v33 = vpop.f32.mrb[3].mxu0  ;;  %v2548_v30 = vld [vmem:[#allocation8 + $0x38] sm:$0xff]  }
 0x19d   : > { %v555_v34 = vpack.c.bf16 %v521_v32, %v517_v31 }
 0x19f   : > { %1432 = vmatprep.mubr.bf16.mxu1 %v555_v34 }
 0x1a0   : > { %v526_v35 = vpop.f32.mrb[4].mxu0 }
 0x1a1   : > { %v2471_v36 = vpop.f32.mrb[5].mxu0  ;;  %v527_v38 = vadd.f32 %v526_v35, %v2463_v27 }
 0x1a2   : > { %v530_v37 = vpop.f32.mrb[6].mxu0 }
 0x1a3   : > { %v531_v39 = vadd.f32 %v530_v37, %v2463_v27  ;;  %v2475_v40 = vpop.f32.mrb[7].mxu0 }
 0x1a5   : > { %v556_v41 = vpack.c.bf16 %v531_v39, %v527_v38 }
 0x1a7   : > { %1433 = vmatmul.mubr.bf16.vlgmr.msra.gmra.mrb[0].mxu1 %v556_v41 }
 0x1a8   : > { %871 = vmatpush1.bf16.msra.mxu1 %v2368_v2  ;;  %902 = vmatprep.mubr.bf16.mxu1 %v2007_v0 }
 0x1a9   : > { %872 = vmatprep.subr.bf16.mxu1 %v2371_v3 }
 0x1ac   : > { %873 = vmatpush1.bf16.msra.mxu1 %v2374_v4 }
 0x1ad   : > { %874 = vmatprep.subr.bf16.mxu1 %v2377_v5 }
 0x1b0   : > { %875 = vmatpush1.bf16.msra.mxu1 %v2379_v6 }
 0x1b1   : > { %876 = vmatprep.subr.bf16.mxu1 %v2381_v7 }
 0x1b4   : > { %877 = vmatpush1.bf16.msra.mxu1 %v2391_v10 }
 0x1b5   : > { %1496 = vmatprep.subr.bf16.mxu1 %v2385_v8 }
 0x1b7   : > { %1347 = vmatmul.mubr.msk.bf16.vlgmr.msra.gmra.mrb[4].mxu1 %vm475_vm0, %v862_v53 }
 0x1b8   : > { %912 = vmatprep.mubr.bf16.mxu1 %v2007_v0  ;;  %1497 = vmatpush3.bf16.msra.mxu1 %v2385_v8 }
 0x1b9   : > { %1498 = vmatprep.subr.bf16.mxu1 %v2389_v9 }
 0x1bc   : > { %1499 = vmatpush3.bf16.msra.mxu1 %v2389_v9 }
 0x1bd   : > { %1500 = vmatprep.subr.bf16.mxu1 %v2401_v13 }
 0x1bf   : > { %1348 = vmatmul.mubr.msk.bf16.gmra.mrb[8].mxu1 %vm475_vm0, %v863_v56 }
 0x1c0   : > { %1501 = vmatpush3.bf16.msra.mxu1 %v2401_v13 }
 0x1c1   : > { %1502 = vmatprep.subr.bf16.mxu1 %v2414_v18 }
 0x1c4   : > { %1503 = vmatpush3.bf16.msra.mxu1 %v2414_v18 }
 0x1c5   : > { %1504 = vmatprep.subr.bf16.mxu1 %v2424_v19 }
 0x1c8   : > { %1505 = vmatpush3.bf16.msra.mxu1 %v2424_v19 }
 0x1c9   : > { %1506 = vmatprep.subr.bf16.mxu1 %v2431_v20 }
 0x1cc   : > { %1507 = vmatpush3.bf16.msra.mxu1 %v2431_v20 }
 0x1cd   : > { %1508 = vmatprep.subr.bf16.mxu1 %v2436_v21 }
 0x1d0   : > { %1509 = vmatpush3.bf16.msra.mxu1 %v2436_v21 }
 0x1d1   : > { %1510 = vmatprep.subr.bf16.mxu1 %v2447_v22 }
 0x1d4   : > { %1511 = vmatpush3.bf16.msra.mxu1 %v2447_v22 }
 0x1d5   : > { %1516 = vmatprep.subr.bf16.mxu1 %v2519_v14 }
 0x27a   : > { %v1434_v43 = vpop.f32.mrb[0].mxu1 }
 0x27b   : > { %v639_v44 = vpop.f32.mrb[1].mxu1  ;;  %v656_v45 = vsel %vm417_vm1, %v1434_v43, -1e+30 }
 0x27c   : > { %662 = vmax.xlane.f32.xlu1 %v656_v45  ;;  %v1435_v46 = vpop.f32.mrb[2].mxu1  ;;  %v654_v47 = vsel %vm417_vm1, %v639_v44, -1e+30 }
 0x27d   : > { %658 = vmax.xlane.f32.xlu0 %v654_v47  ;;  %v642_v48 = vpop.f32.mrb[3].mxu1  ;;  %v657_v49 = vsel %vm417_vm1, %v1435_v46, -1e+30 }
 0x27e   : > { %v655_v50 = vsel %vm417_vm1, %v642_v48, -1e+30 }
 0x280   : > { %664 = vmax.xlane.f32.xlu1 %v657_v49 }
 0x281   : > { %660 = vmax.xlane.f32.xlu0 %v655_v50 }
 0x28a   : > { %v904_v31 = vpop.f32.mrb[4].mxu1 }
 0x28b   : > { %v2554_v32 = vadd.f32 %v904_v31, %v2463_v27  ;;  %v2556_v34 = vpop.f32.mrb[5].mxu1 }
 0x28c   : > { %v908_v35 = vpop.f32.mrb[6].mxu1 }
 0x28d   : > { %v2559_v37 = vadd.f32 %v908_v35, %v2463_v27  ;;  %v2561_v38 = vpop.f32.mrb[7].mxu1 }
 0x28f   : > { %v943_v41 = vpack.c.bf16 %v2559_v37, %v2554_v32 }
 0x292   : > { %v914_v39 = vpop.f32.mrb[8].mxu1 }
 0x293   : > { %v2566_v43 = vadd.f32 %v914_v39, %v2463_v27  ;;  %v2568_v44 = vpop.f32.mrb[9].mxu1 }
 0x309   : > { %v663_v57 = vpop.xlane.xlu1 %662 }
 0x30a   : > { %v668_v58 = vsub.f32 %v656_v45, %v663_v57  ;;  %v659_v59 = vpop.xlane.xlu0 %658  ;;  %v918_v45 = vpop.f32.mrb[10].mxu1 }
 0x30b   : > { %v666_v60 = vsub.f32 %v654_v47, %v659_v59  ;;  %v2571_v46 = vadd.f32 %v918_v45, %v2463_v27  ;;  %v2573_v47 = vpop.f32.mrb[11].mxu1 }
 0x30c   : > { %v674_v61 = vmul.f32 1.442695, %v668_v58 }
 0x30d   : > { %v670_v62 = vmul.f32 1.442695, %v666_v60  ;;  %v665_v63 = vpop.xlane.xlu1 %664  ;;  %v944_v48 = vpack.c.bf16 %v2571_v46, %v2566_v43 }
 0x30e   : > { %v669_v0 = vsub.f32 %v657_v49, %v665_v63  ;;  %v661_v1 = vpop.xlane.xlu0 %660  ;;  %v431_v49 = vsub.s32 1, %v2454_v24 }
 0x30f   : > { %1699 = vpow2.f32 %v670_v62  ;;  %v667_v2 = vsub.f32 %v655_v50, %v661_v1 }
 0x310   : > { %v676_v3 = vmul.f32 1.442695, %v669_v0  ;;  %1701 = vpow2.f32 %v674_v61  ;;  %v2579_v50 = vrot.slane %v2460_v26, %v431_v49 }
 0x311   : > { %v672_v4 = vmul.f32 1.442695, %v667_v2 }
 0x312   : > { %1703 = vpow2.f32 %v676_v3  ;;  %v529_v51 = vadd.f32 %v2471_v36, %v2579_v50  ;;  %v519_v52 = vadd.f32 %v2465_v29, %v2579_v50  ;;  %v533_v27 = vadd.f32 %v2475_v40, %v2579_v50 }
 0x313   : > { %1705 = vpow2.f32 %v672_v4  ;;  %v523_v53 = vadd.f32 %v2469_v33, %v2579_v50 }
 0x314   : > { %v541_v54 = vmul.f32 0.70710677, %v529_v51  ;;  %v539_v55 = vmul.f32 0.70710677, %v519_v52  ;;  %v542_v57 = vmul.f32 0.70710677, %v533_v27 }
 0x315   : > { %v540_v24 = vmul.f32 0.70710677, %v523_v53  ;;  %v537_v62 = vmul.f32 0.5, %v529_v51  ;;  %v535_v1 = vmul.f32 0.5, %v519_v52 }
 0x316   : > { %1707 = verf.f32 %v541_v54 }
 0x317   : > { %1709 = verf.f32 %v539_v55 }
 0x318   : > { %1711 = verf.f32 %v542_v57 }
 0x319   : > { %v1700_v5 = vpop.eup %1699  ;;  %1713 = verf.f32 %v540_v24 }
 0x31a   : > { %678 = vadd.xlane.f32.xlu0 %v1700_v5  ;;  %v1702_v6 = vpop.eup %1701 }
 0x31c   : > { %v1704_v7 = vpop.eup %1703 }
 0x31d   : > { %v1706_v10 = vpop.eup %1705  ;;  %v687_v12 = vpack.c.bf16 %v1704_v7, %v1702_v6 }
 0x31e   : > { %682 = vadd.xlane.f32.xlu0 %v1702_v6  ;;  %680 = vadd.xlane.f32.xlu1 %v1706_v10  ;;  %v686_v11 = vpack.c.bf16 %v1706_v10, %v1700_v5  ;;  %v538_v5 = vmul.f32 0.5, %v533_v27 }
 0x320   : > { %1452 = vmatprep.mubr.bf16.mxu0 %v686_v11  ;;  %v1708_v29 = vpop.eup %1707 }
 0x321   : > { %1453 = vmatmul.mubr.bf16.vlgmr.msra.gmra.mrb[8].mxu0 %v687_v12  ;;  %v1710_v40 = vpop.eup %1709  ;;  %v549_v60 = vadd.f32 1.0, %v1708_v29  ;;  %v536_v12 = vmul.f32 0.5, %v523_v53 }
 0x322   : > { %684 = vadd.xlane.f32.xlu1 %v1704_v7  ;;  %1457 = vmatpush3.bf16.msra.mxu0 %v2519_v14  ;;  %v1712_v59 = vpop.eup %1711  ;;  %v547_v61 = vadd.f32 1.0, %v1710_v40 }
 0x323   : > { %1458 = vmatprep.subr.bf16.mxu0 %v2521_v15  ;;  %v1714_v33 = vpop.eup %1713  ;;  %v550_v63 = vadd.f32 1.0, %v1712_v59  ;;  %v553_v6 = vmul.f32 %v549_v60, %v537_v62 }
 0x324   : > { %v548_v2 = vadd.f32 1.0, %v1714_v33  ;;  %v551_v31 = vmul.f32 %v547_v61, %v535_v1 }
 0x325   : > { %v554_v54 = vmul.f32 %v550_v63, %v538_v5 }
 0x326   : > { %1459 = vmatpush3.bf16.msra.mxu0 %v2521_v15  ;;  %v552_v57 = vmul.f32 %v548_v2, %v536_v12 }
 0x327   : > { %1460 = vmatprep.subr.bf16.mxu0 %v2527_v16 }
 0x32a   : > { %1461 = vmatpush3.bf16.msra.mxu0 %v2527_v16 }
 0x32b   : > { %1462 = vmatprep.subr.bf16.mxu0 %v2531_v17 }
 0x32e   : > { %1463 = vmatpush3.bf16.msra.mxu0 %v2531_v17 }
 0x32f   : > { %1464 = vmatprep.subr.bf16.mxu0 %v2535_v23 }
 0x332   : > { %1465 = vmatpush3.bf16.msra.mxu0 %v2535_v23 }
 0x333   : > { %1466 = vmatprep.subr.bf16.mxu0 %v2539_v25 }
 0x336   : > { %1467 = vmatpush3.bf16.msra.mxu0 %v2539_v25 }
 0x337   : > { %1468 = vmatprep.subr.bf16.mxu0 %v2543_v28 }
 0x33a   : > { %1469 = vmatpush3.bf16.msra.mxu0 %v2543_v28 }
 0x33b   : > { %1470 = vmatprep.subr.bf16.mxu0 %v2548_v30 }
 0x33e   : > { %1471 = vmatpush3.bf16.msra.mxu0 %v2548_v30 }
 0x33f   : > { %1476 = vmatprep.subr.bf16.mxu0 %v2385_v8 }
 0x3a7   : > { %v679_v56 = vpop.xlane.xlu0 %678 }
 0x3ab   : > { %v681_v58 = vpop.xlane.xlu1 %680  ;;  %v683_v26 = vpop.xlane.xlu0 %682 }
 0x3ac   : > { %1715 = vrcp.f32 %v683_v26 }
 0x3ad   : > { %1717 = vrcp.f32 %v679_v56 }
 0x3af   : > { %v685_v36 = vpop.xlane.xlu1 %684 }
 0x3b0   : > { %1719 = vrcp.f32 %v685_v36 }
 0x3b1   : > { %1721 = vrcp.f32 %v681_v58 }
 0x3b6   : > { %v1716_v0 = vpop.eup %1715 }
 0x3b7   : > { %v1718_v4 = vpop.eup %1717 }
 0x3ba   : > { %v1720_v11 = vpop.eup %1719 }
 0x3bb   : > { %v1722_v45 = vpop.eup %1721 }
 0x3f4   : > { %v1454_v3 = vpop.f32.mrb[8].mxu0 }
 0x3f5   : > { %v743_v7 = vmul.f32 %v1716_v0, %v1454_v3  ;;  %v722_v10 = vpop.f32.mrb[9].mxu0 }
 0x3f6   : > { %v741_v35 = vmul.f32 %v1718_v4, %v722_v10  ;;  %v1455_v39 = vpop.f32.mrb[10].mxu0 }
 0x3f7   : > { %v747_v49 = vmul.f32 %v743_v7, %v553_v6  ;;  %v744_v55 = vmul.f32 %v1720_v11, %v1455_v39  ;;  %v725_v51 = vpop.f32.mrb[11].mxu0 }
 0x3f8   : > { %v745_v56 = vmul.f32 %v741_v35, %v551_v31  ;;  %v742_v52 = vmul.f32 %v1722_v45, %v725_v51 }
 0x3f9   : > { %v748_v24 = vmul.f32 %v744_v55, %v554_v54 }
 0x3fa   : > { %v746_v58 = vmul.f32 %v742_v52, %v552_v57 }
 0x3fb   : > { %v750_v26 = vpack.c.bf16 %v748_v24, %v747_v49 }
 0x3fc   : > { %v749_v27 = vpack.c.bf16 %v746_v58, %v745_v56 }
 0x3fe   : > { %1472 = vmatprep.mubr.bf16.mxu0 %v749_v27 }
 0x3ff   : > { %1473 = vmatmul.mubr.bf16.vlgmr.msra.gmra.mrb[12].mxu0 %v750_v26 }
 0x400   : > { %1477 = vmatpush3.bf16.xpose.msra.mxu0 %v2385_v8  ;;  %1492 = vmatprep.mubr.bf16.mxu0 %v943_v41  ;;  %v2613_v8 = vld [vmem:[%s2742_s5] ss:$0 sm:$0xff] }
 0x401   : > { %1478 = vmatprep.subr.bf16.mxu0 %v2389_v9 }
 0x408   : > { %1479 = vmatpush3.bf16.xpose.msra.mxu0 %v2389_v9 }
 0x409   : > { %1480 = vmatprep.subr.bf16.mxu0 %v2401_v13 }
 0x410   : > { %1481 = vmatpush3.bf16.xpose.msra.mxu0 %v2401_v13 }
 0x411   : > { %1482 = vmatprep.subr.bf16.mxu0 %v2414_v18 }
 0x418   : > { %1483 = vmatpush3.bf16.xpose.msra.mxu0 %v2414_v18 }
 0x419   : > { %1484 = vmatprep.subr.bf16.mxu0 %v2424_v19 }
 0x420   : > { %1485 = vmatpush3.bf16.xpose.msra.mxu0 %v2424_v19 }
 0x421   : > { %1486 = vmatprep.subr.bf16.mxu0 %v2431_v20 }
 0x428   : > { %1487 = vmatpush3.bf16.xpose.msra.mxu0 %v2431_v20 }
 0x429   : > { %1488 = vmatprep.subr.bf16.mxu0 %v2436_v21 }
 0x430   : > { %1489 = vmatpush3.bf16.xpose.msra.mxu0 %v2436_v21 }
 0x431   : > { %1490 = vmatprep.subr.bf16.mxu0 %v2447_v22 }
 0x438   : > { %1491 = vmatpush3.bf16.xpose.msra.mxu0 %v2447_v22 }
 0x43f   : > { %1493 = vmatmul.mubr.bf16.vlgmr.msra.gmra.mrb[16].mxu0 %v944_v48 }
 0x4d2   : > { %v1474_v9 = vpop.f32.mrb[12].mxu0 }
 0x4d3   : > { %v848_v13 = vadd.f32 %v1474_v9, %v2613_v8  ;;  %v839_v18 = vpop.f32.mrb[13].mxu0 }
 0x4d4   : > { %v840_v19 = vadd.f32 %v2613_v8, %v839_v18  ;;  %v1475_v20 = vpop.f32.mrb[14].mxu0 }
 0x4d5   : > { %856 = vst [vmem:[%s2619_s17 + $0x10] sm:$0xff] %v848_v13  ;;  %v851_v21 = vadd.f32 %v1475_v20, %v2613_v8  ;;  %v842_v22 = vpop.f32.mrb[15].mxu0 }
 0x4d6   : > { %854 = vst [vmem:[%s2619_s17] sm:$0xff] %v840_v19  ;;  %v843_v32 = vadd.f32 %v2613_v8, %v842_v22 }
 0x4d7   : > { %857 = vst [vmem:[%s2619_s17 + $0x18] sm:$0xff] %v851_v21 }
 0x4d8   : > { %855 = vst [vmem:[%s2619_s17 + $0x8] sm:$0xff] %v843_v32 }
 0x512   : > { %v1494_v37 = vpop.f32.mrb[16].mxu0 }
 0x513   : > { %v979_v41 = vpop.f32.mrb[17].mxu0  ;;  %v996_v36 = vsel %vm417_vm1, %v1494_v37, -1e+30 }
 0x514   : > { %v1495_v43 = vpop.f32.mrb[18].mxu0  ;;  %v994_v46 = vsel %vm417_vm1, %v979_v41, -1e+30 }
 0x515   : > { %998 = vmax.xlane.f32.xlu0 %v994_v46  ;;  %v982_v48 = vpop.f32.mrb[19].mxu0  ;;  %v997_v29 = vsel %vm417_vm1, %v1495_v43, -1e+30 }
 0x516   : > { %v995_v53 = vsel %vm417_vm1, %v982_v48, -1e+30 }
 0x517   : > { %1000 = vmax.xlane.f32.xlu1 %v995_v53 }
 0x519   : > { %1002 = vmax.xlane.f32.xlu0 %v996_v36 }
 0x51b   : > { %1004 = vmax.xlane.f32.xlu1 %v997_v29 }
 0x5a2   : > { %v999_v40 = vpop.xlane.xlu0 %998 }
 0x5a3   : > { %v1006_v59 = vsub.f32 %v994_v46, %v999_v40 }
 0x5a4   : > { %v1001_v33 = vpop.xlane.xlu1 %1000 }
 0x5a5   : > { %v1010_v60 = vmul.f32 1.442695, %v1006_v59  ;;  %v1007_v61 = vsub.f32 %v995_v53, %v1001_v33 }
 0x5a6   : > { %v1003_v62 = vpop.xlane.xlu0 %1002 }
 0x5a7   : > { %1723 = vpow2.f32 %v1010_v60  ;;  %v1012_v63 = vmul.f32 1.442695, %v1007_v61  ;;  %v1008_v0 = vsub.f32 %v996_v36, %v1003_v62 }
 0x5a8   : > { %v1005_v1 = vpop.xlane.xlu1 %1004 }
 0x5a9   : > { %1725 = vpow2.f32 %v1012_v63  ;;  %v1014_v2 = vmul.f32 1.442695, %v1008_v0  ;;  %v1009_v3 = vsub.f32 %v997_v29, %v1005_v1 }
 0x5ab   : > { %1727 = vpow2.f32 %v1014_v2  ;;  %v1016_v4 = vmul.f32 1.442695, %v1009_v3 }
 0x5ad   : > { %1729 = vpow2.f32 %v1016_v4 }
 0x5b1   : > { %v1724_v5 = vpop.eup %1723 }
 0x5b2   : > { %1018 = vadd.xlane.f32.xlu0 %v1724_v5 }
 0x5b3   : > { %v1726_v42 = vpop.eup %1725 }
 0x5b4   : > { %1020 = vadd.xlane.f32.xlu1 %v1726_v42  ;;  %v1026_v6 = vpack.c.bf16 %v1726_v42, %v1724_v5 }
 0x5b5   : > { %v1728_v7 = vpop.eup %1727 }
 0x5b6   : > { %1022 = vadd.xlane.f32.xlu0 %v1728_v7  ;;  %1512 = vmatprep.mubr.bf16.mxu1 %v1026_v6 }
 0x5b7   : > { %v1730_v10 = vpop.eup %1729 }
 0x5b8   : > { %1024 = vadd.xlane.f32.xlu1 %v1730_v10  ;;  %v1027_v11 = vpack.c.bf16 %v1730_v10, %v1728_v7 }
 0x5ba   : > { %1513 = vmatmul.mubr.bf16.vlgmr.msra.gmra.mrb[12].mxu1 %v1027_v11 }
 0x5bb   : > { %1517 = vmatpush3.bf16.msra.mxu1 %v2519_v14  ;;  %v917_v14 = vadd.f32 %v2568_v44, %v2579_v50 }
 0x5bc   : > { %1518 = vmatprep.subr.bf16.mxu1 %v2521_v15 }
 0x5bf   : > { %1519 = vmatpush3.bf16.msra.mxu1 %v2521_v15  ;;  %v907_v15 = vadd.f32 %v2556_v34, %v2579_v50 }
 0x5c0   : > { %1520 = vmatprep.subr.bf16.mxu1 %v2527_v16 }
 0x5c1   : > { %v923_v49 = vmul.f32 0.5, %v907_v15 }
 0x5c3   : > { %1521 = vmatpush3.bf16.msra.mxu1 %v2527_v16  ;;  %v921_v16 = vadd.f32 %v2573_v47, %v2579_v50 }
 0x5c4   : > { %1522 = vmatprep.subr.bf16.mxu1 %v2531_v17 }
 0x5c5   : > { %v926_v55 = vmul.f32 0.5, %v921_v16 }
 0x5c7   : > { %1523 = vmatpush3.bf16.msra.mxu1 %v2531_v17  ;;  %v911_v17 = vadd.f32 %v2561_v38, %v2579_v50  ;;  %v925_v50 = vmul.f32 0.5, %v917_v14 }
 0x5c8   : > { %1524 = vmatprep.subr.bf16.mxu1 %v2535_v23 }
 0x5c9   : > { %v928_v31 = vmul.f32 0.70710677, %v911_v17  ;;  %v924_v57 = vmul.f32 0.5, %v911_v17 }
 0x5cb   : > { %1525 = vmatpush3.bf16.msra.mxu1 %v2535_v23  ;;  %v929_v23 = vmul.f32 0.70710677, %v917_v14 }
 0x5cc   : > { %1526 = vmatprep.subr.bf16.mxu1 %v2539_v25 }
 0x5cd   : > { %1731 = verf.f32 %v929_v23 }
 0x5cf   : > { %1527 = vmatpush3.bf16.msra.mxu1 %v2539_v25  ;;  %v927_v25 = vmul.f32 0.70710677, %v907_v15 }
 0x5d0   : > { %1528 = vmatprep.subr.bf16.mxu1 %v2543_v28 }
 0x5d1   : > { %1733 = verf.f32 %v927_v25 }
 0x5d3   : > { %1529 = vmatpush3.bf16.msra.mxu1 %v2543_v28  ;;  %v930_v28 = vmul.f32 0.70710677, %v921_v16 }
 0x5d4   : > { %1530 = vmatprep.subr.bf16.mxu1 %v2548_v30 }
 0x5d5   : > { %1735 = verf.f32 %v930_v28 }
 0x5d6   : > { %1737 = verf.f32 %v928_v31 }
 0x5d7   : > { %1531 = vmatpush3.bf16.msra.mxu1 %v2548_v30  ;;  %v1732_v34 = vpop.eup %1731 }
 0x5d8   : > { %v937_v45 = vadd.f32 1.0, %v1732_v34 }
 0x5da   : > { %v941_v26 = vmul.f32 %v937_v45, %v925_v50 }
 0x5db   : > { %v1734_v47 = vpop.eup %1733 }
 0x5dc   : > { %v935_v54 = vadd.f32 1.0, %v1734_v47 }
 0x5de   : > { %v939_v18 = vmul.f32 %v935_v54, %v923_v49 }
 0x5df   : > { %v1736_v39 = vpop.eup %1735 }
 0x5e0   : > { %v1738_v38 = vpop.eup %1737  ;;  %v938_v51 = vadd.f32 1.0, %v1736_v39 }
 0x5e1   : > { %v936_v52 = vadd.f32 1.0, %v1738_v38 }
 0x5e2   : > { %v942_v32 = vmul.f32 %v938_v51, %v926_v55 }
 0x5e3   : > { %v940_v46 = vmul.f32 %v936_v52, %v924_v57 }
 0x63f   : > { %v1019_v12 = vpop.xlane.xlu0 %1018 }
 0x641   : > { %v1021_v35 = vpop.xlane.xlu1 %1020 }
 0x643   : > { %v1023_v30 = vpop.xlane.xlu0 %1022 }
 0x644   : > { %1739 = vrcp.f32 %v1023_v30 }
 0x645   : > { %v1025_v44 = vpop.xlane.xlu1 %1024  ;;  %1741 = vrcp.f32 %v1019_v12 }
 0x646   : > { %1743 = vrcp.f32 %v1025_v44 }
 0x647   : > { %1745 = vrcp.f32 %v1021_v35 }
 0x64e   : > { %v1740_v56 = vpop.eup %1739 }
 0x64f   : > { %v1742_v58 = vpop.eup %1741 }
 0x650   : > { %v1744_v13 = vpop.eup %1743 }
 0x651   : > { %v1746_v21 = vpop.eup %1745 }
 0x68d   : > { %v1514_v24 = vpop.f32.mrb[12].mxu1 }
 0x68e   : > { %v1083_v27 = vmul.f32 %v1740_v56, %v1514_v24  ;;  %v1062_v9 = vpop.f32.mrb[13].mxu1 }
 0x68f   : > { %v1081_v19 = vmul.f32 %v1742_v58, %v1062_v9  ;;  %v1515_v20 = vpop.f32.mrb[14].mxu1 }
 0x690   : > { %v1087_v22 = vmul.f32 %v1083_v27, %v941_v26  ;;  %v1084_v37 = vmul.f32 %v1744_v13, %v1515_v20  ;;  %v1065_v41 = vpop.f32.mrb[15].mxu1 }
 0x691   : > { %v1085_v43 = vmul.f32 %v1081_v19, %v939_v18  ;;  %v1082_v48 = vmul.f32 %v1746_v21, %v1065_v41 }
 0x692   : > { %v1088_v53 = vmul.f32 %v1084_v37, %v942_v32 }
 0x693   : > { %v1086_v36 = vmul.f32 %v1082_v48, %v940_v46 }
 0x694   : > { %v1090_v29 = vpack.c.bf16 %v1088_v53, %v1087_v22 }
 0x695   : > { %v1089_v40 = vpack.c.bf16 %v1086_v36, %v1085_v43 }
 0x697   : > { %1532 = vmatprep.mubr.bf16.mxu1 %v1089_v40 }
 0x698   : > { %1533 = vmatmul.mubr.bf16.vlgmr.msra.gmra.mrb[16].mxu1 %v1090_v29 }
 0x76b   : > { %v1534_v59 = vpop.f32.mrb[16].mxu1 }
 0x76c   : > { %v1134_v33 = vadd.f32 %v1534_v59, %v2613_v8  ;;  %v1125_v60 = vpop.f32.mrb[17].mxu1 }
 0x76d   : > { %v1126_v61 = vadd.f32 %v2613_v8, %v1125_v60  ;;  %v1535_v62 = vpop.f32.mrb[18].mxu1 }
 0x76e   : > { %1142 = vst [vmem:[%s2619_s17 + $0x30] sm:$0xff] %v1134_v33  ;;  %v1137_v63 = vadd.f32 %v1535_v62, %v2613_v8  ;;  %v1128_v0 = vpop.f32.mrb[19].mxu1 }
 0x76f   : > { %1140 = vst [vmem:[%s2619_s17 + $0x20] sm:$0xff] %v1126_v61  ;;  %v1129_v1 = vadd.f32 %v2613_v8, %v1128_v0 }
 0x770   : > { %1143 = vst [vmem:[%s2619_s17 + $0x38] sm:$0xff] %v1137_v63 }
 0x771   : > { %1141 = vst [vmem:[%s2619_s17 + $0x28] sm:$0xff] %v1129_v1 }
 0x772   : > { %1876 = shalt.err (!%p1873_p2)
}
 0x773   : > { %s1877_s17 = scalar_lea.hbm %s2670_s18, 1024  ;;  %s1881_s6 = scalar_lea.hbm %s2800_s19, 8192 }
 0x774   : > { %p1878_p11 = scmp.ne.s32.totalorder %s2670_s18, %s1877_s17  ;;  %p1882_p10 = scmp.lt.u32.totalorder %s2670_s18, %s2800_s19 }
 0x775   : > { %p1883_p13 = scmp.lt.u32.totalorder %s1881_s6, %s1877_s17  ;;  %p1885_p5 = scmp.lt.u32.totalorder %s1877_s17, %s2670_s18 }
 0x776   : > { %p1879_p0 = pnand %p1878_p11, %p2212_p8 }
 0x777   : > { %p1884_p9 = por %p1883_p13, %p1882_p10 }
 0x778   : > { %p1880_p3 = pneg %p1879_p0 }
 0x779   : > { %p1886_p6 = por %p1885_p5, %p1884_p9 }
 0x77b   : > { %p1887_p7 = pnand %p1886_p6, %p1880_p3 }
 0x77d   : > { %1890 = shalt.err (!%p1887_p7)
}
 0x77e   : > { %s2009_s16 = smov 128   ;;  %s2010_s24 = smov 8  }
 0x77f   : > { %1548 = dma.vmem_to_hbm [thread:$0]  (%p2212_p8), %s2662_s14, 1024, %s2670_s18, %s1145_s8, %s2009_s16, %s2009_s16, %s2010_s24  }
 0x780 PF: > { %s2801_s10 = sld [smem:[#allocation16_spill]]  ;;  %s2802_s11 = sld [smem:[#allocation19_spill]] }
 0x781   : > { %p1573_p1 = scmp.ge.s32.totalorder %s1997_s7, 2 }
 0x786   : > { %s1177_s9 = sand.u32 1, %s2801_s10   ;;  %p2803_p4 = scmp.ne.s32.totalorder %s2802_s11, 0 }
 0x787   : > { %s1178_s15 = scalar_lea.sflag [#allocation4], %s1177_s9 }
 0x788   : > { %p1565_p12 = pnand %p1573_p1, %p2803_p4 }
 0x78a   : > { %1952 = dma.done.wait (!%p1565_p12), %s1178_s15, 1024  }
 0x78b   : > { %1954 = vsyncadd (!%p1565_p12), %s1178_s15, 4294966272  ;;  %s26_s7 = sadd.s32 1, %s1997_s7   ;;  %s2804_s17 = smov %s2283_s21 }
 0x78c   : > { %p23_p2 = scmp.ge.s32.totalorder %s26_s7, 10   ;;  %s2805_s14 = sld [smem:[#allocation20_spill]] }
 0x78d   : > { %s2806_s13 = sld [smem:[#allocation22_spill]]  ;;  %s2807_s21 = smov %s1961_s22 }
 0x78e   : > { %s2808_s22 = smov %s1965_s23  ;;  %s2809_s23 = smov %s2804_s17 }
 0x78f   : > { %s2810_s24 = smov %s1973_s25  ;;  %s2811_s25 = smov %s1977_s26 }
 0x790   : > { %s2812_s26 = smov %s2229_s2  ;;  %s2813_s27 = smov %s1989_s29 }
 0x791   : > { %s2814_s28 = smov %s1993_s30  ;;  %25 = sbr.rel (!%p23_p2) target bundleno = 16 (0x10), region = 110 }
 0x792   : > { %s2815_s29 = smov %s2805_s14 }
 0x793   : > { %s2816_s30 = smov %s2806_s13 }
 0x798   :  { %1183 = vsyncpa [#allocation3], 1 }
 0x799   :  { %1185 = vsyncpa [#allocation3 + $0x1], 1 }
 0x79a   :  { %1186 = vsyncpa [#allocation6], 1 }
 0x79b   :  { %1188 = vsyncpa [#allocation6 + $0x1], 1 }
 0x79c   :  { %1189 = vsyncpa [#allocation9], 1 }
 0x79d   :  { %1190 = vsyncpa [#allocation4], 1 }
 0x79e   :  { %1192 = vsyncpa [#allocation4 + $0x1], 1 }

</bundles_post_ra>
